<compile_context>
chip_gen: v5e
topology: v5e:2x2
jax: 0.10.0
libtpu: 0.0.40
codegen_flags: <defaults>
</compile_context>

<pallas_src>
import jax
import jax.numpy as jnp
from jax.experimental import pallas as pl
from jax.experimental.pallas import tpu as pltpu

BN_EPS = 1e-5


def _round_up(x, m):
    return ((x + m - 1) // m) * m


def mlp_kernel(x_ref, w1_ref, b1_ref, s_ref, t_ref, w2_ref, b2_ref,
               feat_ref, pred_ref):
    # fc: Linear -> ReLU -> Dropout(identity, eval) -> folded BatchNorm1d
    h = jnp.dot(x_ref[...], w1_ref[...], preferred_element_type=jnp.float32)
    h = jnp.maximum(h + b1_ref[...], 0.0)
    feat = h * s_ref[...] + t_ref[...]            # BN folded: scale/shift
    feat_ref[...] = feat.astype(feat_ref.dtype)

    # pred: Linear(hidden_dim -> num_labels), lane-dense padded output
    p = jnp.dot(feat.astype(w2_ref.dtype), w2_ref[...],
                preferred_element_type=jnp.float32)
    pred_ref[...] = (p + b2_ref[...]).astype(pred_ref.dtype)


def mlp_forward(x, params, *, block_b=128, compute_dtype=jnp.float32):
    """Returns (feature, pred_y) matching the eval-mode PyTorch MLP."""
    B, D = x.shape
    H = params["w1"].shape[1]
    L = params["w2"].shape[1]

    # Lane-dense padded feature / label widths.
    HP = _round_up(H, 128)
    LP = _round_up(L, 128)

    # Batch tile (multiple of 8 sublanes); pad batch so the grid is exact.
    TB = min(_round_up(block_b, 8), _round_up(B, 8))
    BP = _round_up(B, TB)

    xp = x if BP == B else jnp.pad(x, ((0, BP - B), (0, 0)))
    xp = xp.astype(compute_dtype)

    # Fold BatchNorm into a scale/shift (computed once, outside the kernel).
    s = params["gamma"] * jax.lax.rsqrt(params["running_var"] + BN_EPS)
    t = params["beta"] - params["running_mean"] * s

    # Zero-pad feature/label dims; padded columns/rows contribute exactly 0.
    w1 = jnp.pad(params["w1"], ((0, 0), (0, HP - H))).astype(compute_dtype)
    b1 = jnp.pad(params["b1"], ((0, 0), (0, HP - H))).astype(jnp.float32)
    s = jnp.pad(s, ((0, 0), (0, HP - H))).astype(jnp.float32)
    t = jnp.pad(t, ((0, 0), (0, HP - H))).astype(jnp.float32)
    w2 = jnp.pad(params["w2"], ((0, HP - H), (0, LP - L))).astype(compute_dtype)
    b2 = jnp.pad(params["b2"], ((0, 0), (0, LP - L))).astype(jnp.float32)

    grid = (BP // TB,)

    itemsize = jnp.dtype(compute_dtype).itemsize
    cost = pl.CostEstimate(
        flops=2 * BP * (D * HP + HP * LP),
        transcendentals=0,
        bytes_accessed=(BP * D * itemsize            # x
                        + (D * HP + HP * LP) * itemsize  # w1, w2
                        + 4 * HP * 4 + LP * 4        # b1, s, t, b2
                        + BP * HP * 4 + BP * LP * 4),  # feature, pred outputs
    )

    feat_p, pred_p = pl.pallas_call(
        mlp_kernel,
        out_shape=(
            jax.ShapeDtypeStruct((BP, HP), jnp.float32),
            jax.ShapeDtypeStruct((BP, LP), jnp.float32),
        ),
        grid=grid,
        in_specs=[
            pl.BlockSpec((TB, D), lambda i: (i, 0)),   # x: row-tiled
            pl.BlockSpec((D, HP), lambda i: (0, 0)),   # w1: VMEM-resident
            pl.BlockSpec((1, HP), lambda i: (0, 0)),   # b1
            pl.BlockSpec((1, HP), lambda i: (0, 0)),   # BN scale
            pl.BlockSpec((1, HP), lambda i: (0, 0)),   # BN shift
            pl.BlockSpec((HP, LP), lambda i: (0, 0)),  # w2
            pl.BlockSpec((1, LP), lambda i: (0, 0)),   # b2
        ],
        out_specs=(
            pl.BlockSpec((TB, HP), lambda i: (i, 0)),
            pl.BlockSpec((TB, LP), lambda i: (i, 0)),
        ),
        compiler_params=pltpu.CompilerParams(
            dimension_semantics=("parallel",),
            vmem_limit_bytes=32 * 1024 * 1024,
        ),
        cost_estimate=cost,
    )(xp, w1, b1, s, t, w2, b2)

    # Strip batch / lane padding.
    return feat_p[:B, :H], pred_p[:B, :L]


def make_params(key, input_dim, hidden_dim, num_labels):
    ks = jax.random.split(key, 8)
    # PyTorch stores Linear weight as (out, in); keep it pre-transposed (in, out).
    w1 = jax.random.normal(ks[0], (input_dim, hidden_dim), jnp.float32) * 0.1
    b1 = jax.random.normal(ks[1], (1, hidden_dim), jnp.float32) * 0.05
    gamma = 1.0 + 0.1 * jax.random.normal(ks[2], (1, hidden_dim), jnp.float32)
    beta = 0.1 * jax.random.normal(ks[3], (1, hidden_dim), jnp.float32)
    # Slightly non-trivial running stats to exercise the BN fold.
    running_mean = 0.1 * jax.random.normal(ks[4], (1, hidden_dim), jnp.float32)
    running_var = 1.0 + 0.1 * jnp.abs(
        jax.random.normal(ks[5], (1, hidden_dim), jnp.float32))
    w2 = jax.random.normal(ks[6], (hidden_dim, num_labels), jnp.float32) * 0.1
    b2 = jax.random.normal(ks[7], (1, num_labels), jnp.float32) * 0.05
    return dict(w1=w1, b1=b1, gamma=gamma, beta=beta,
                running_mean=running_mean, running_var=running_var,
                w2=w2, b2=b2)


def mlp_reference(x, p):
    h = jnp.maximum(x @ p["w1"] + p["b1"], 0.0)
    feat = (h - p["running_mean"]) / jnp.sqrt(p["running_var"] + BN_EPS)
    feat = feat * p["gamma"] + p["beta"]
    pred = feat @ p["w2"] + p["b2"]
    return feat, pred


if __name__ == "__main__":
    key = jax.random.PRNGKey(0)
    kx, kp = jax.random.split(key)

    batch, input_dim, hidden_dim, num_labels = 16, 32, 32, 4
    x = jax.random.normal(kx, (batch, input_dim), jnp.float32)
    params = make_params(kp, input_dim, hidden_dim, num_labels)

    feat_ref, pred_ref = mlp_reference(x, params)

    # f32 path (block_b=8 -> 2 grid steps at this toy batch).
    feature, pred_y = mlp_forward(x, params, block_b=8,
                                  compute_dtype=jnp.float32)
    jax.block_until_ready((feature, pred_y))
    assert feature.shape == (batch, hidden_dim)
    assert pred_y.shape == (batch, num_labels)
    assert jnp.allclose(feature, feat_ref, atol=1e-4, rtol=1e-4)
    assert jnp.allclose(pred_y, pred_ref, atol=1e-4, rtol=1e-4)

    # bf16-input path (halves HBM traffic; f32 accumulation), loose tolerance.
    feature16, pred16 = mlp_forward(x, params, block_b=8,
                                    compute_dtype=jnp.bfloat16)
    jax.block_until_ready((feature16, pred16))
    assert jnp.allclose(feature16, feat_ref, atol=0.1, rtol=0.1)
    assert jnp.allclose(pred16, pred_ref, atol=0.1, rtol=0.1)

    print("KERNEL_OK")
</pallas_src>

<mosaic_0001>
module attributes {stable_mosaic.version = 11 : i64} {
  func.func @mlp_kernel(%arg0: i32, %arg1: memref<8x32xf32, #tpu.memory_space<vmem>>, %arg2: memref<32x128xf32, #tpu.memory_space<vmem>>, %arg3: memref<1x128xf32, #tpu.memory_space<vmem>>, %arg4: memref<1x128xf32, #tpu.memory_space<vmem>>, %arg5: memref<1x128xf32, #tpu.memory_space<vmem>>, %arg6: memref<128x128xf32, #tpu.memory_space<vmem>>, %arg7: memref<1x128xf32, #tpu.memory_space<vmem>>, %arg8: memref<8x128xf32, #tpu.memory_space<vmem>>, %arg9: memref<8x128xf32, #tpu.memory_space<vmem>>) attributes {dimension_semantics = [#tpu.dimension_semantics<parallel>], iteration_bounds = array<i64: 2>, scalar_prefetch = 0 : i64, scratch_operands = 0 : i64, tpu.core_type = #tpu.core_type<tc>, window_params = [{transform_indices = @transform_0, window_bounds = array<i64: 8, 32>}, {pipeline_mode = #tpu.pipeline_mode<synchronous>, transform_indices = @transform_1, window_bounds = array<i64: 32, 128>}, {pipeline_mode = #tpu.pipeline_mode<synchronous>, transform_indices = @transform_2, window_bounds = array<i64: 1, 128>}, {pipeline_mode = #tpu.pipeline_mode<synchronous>, transform_indices = @transform_3, window_bounds = array<i64: 1, 128>}, {pipeline_mode = #tpu.pipeline_mode<synchronous>, transform_indices = @transform_4, window_bounds = array<i64: 1, 128>}, {pipeline_mode = #tpu.pipeline_mode<synchronous>, transform_indices = @transform_5, window_bounds = array<i64: 128, 128>}, {pipeline_mode = #tpu.pipeline_mode<synchronous>, transform_indices = @transform_6, window_bounds = array<i64: 1, 128>}, {transform_indices = @transform_7, window_bounds = array<i64: 8, 128>}, {transform_indices = @transform_8, window_bounds = array<i64: 8, 128>}]} {
    %c0 = arith.constant 0 : index
    %c0_0 = arith.constant 0 : index
    %0 = vector.load %arg1[%c0, %c0_0] : memref<8x32xf32, #tpu.memory_space<vmem>>, vector<8x32xf32>
    %c0_1 = arith.constant 0 : index
    %c0_2 = arith.constant 0 : index
    %1 = vector.load %arg2[%c0_1, %c0_2] : memref<32x128xf32, #tpu.memory_space<vmem>>, vector<32x128xf32>
    %cst = arith.constant dense<0.000000e+00> : vector<8x128xf32>
    %2 = tpu.matmul %0, %1, %cst {dimension_numbers = #tpu.dot_dimension_numbers<[1], [0], [0], [1], [0, 0, 1, 1], [], []>} : vector<8x32xf32>, vector<32x128xf32>, vector<8x128xf32> -> vector<8x128xf32>
    %c0_3 = arith.constant 0 : index
    %c0_4 = arith.constant 0 : index
    %3 = vector.load %arg3[%c0_3, %c0_4] : memref<1x128xf32, #tpu.memory_space<vmem>>, vector<1x128xf32>
    %4 = vector.broadcast %3 : vector<1x128xf32> to vector<8x128xf32>
    %5 = arith.addf %2, %4 : vector<8x128xf32>
    %cst_5 = arith.constant 0.000000e+00 : f32
    %6 = vector.broadcast %cst_5 : f32 to vector<8x128xf32>
    %7 = arith.maximumf %5, %6 : vector<8x128xf32>
    %c0_6 = arith.constant 0 : index
    %c0_7 = arith.constant 0 : index
    %8 = vector.load %arg4[%c0_6, %c0_7] : memref<1x128xf32, #tpu.memory_space<vmem>>, vector<1x128xf32>
    %9 = vector.broadcast %8 : vector<1x128xf32> to vector<8x128xf32>
    %10 = arith.mulf %7, %9 : vector<8x128xf32>
    %c0_8 = arith.constant 0 : index
    %c0_9 = arith.constant 0 : index
    %11 = vector.load %arg5[%c0_8, %c0_9] : memref<1x128xf32, #tpu.memory_space<vmem>>, vector<1x128xf32>
    %12 = vector.broadcast %11 : vector<1x128xf32> to vector<8x128xf32>
    %13 = arith.addf %10, %12 : vector<8x128xf32>
    %c0_10 = arith.constant 0 : index
    %c0_11 = arith.constant 0 : index
    %14 = vector.load %arg8[%c0_10, %c0_11] : memref<8x128xf32, #tpu.memory_space<vmem>>, vector<8x128xf32>
    tpu.vector_store %arg8[%c0_10, %c0_11], %13 {strides = array<i32>} : memref<8x128xf32, #tpu.memory_space<vmem>>, vector<8x128xf32>,
    %c0_12 = arith.constant 0 : index
    %c0_13 = arith.constant 0 : index
    %15 = vector.load %arg6[%c0_12, %c0_13] : memref<128x128xf32, #tpu.memory_space<vmem>>, vector<128x128xf32>
    %cst_14 = arith.constant dense<0.000000e+00> : vector<8x128xf32>
    %16 = tpu.matmul %13, %15, %cst_14 {dimension_numbers = #tpu.dot_dimension_numbers<[1], [0], [0], [1], [0, 0, 1, 1], [], []>} : vector<8x128xf32>, vector<128x128xf32>, vector<8x128xf32> -> vector<8x128xf32>
    %c0_15 = arith.constant 0 : index
    %c0_16 = arith.constant 0 : index
    %17 = vector.load %arg7[%c0_15, %c0_16] : memref<1x128xf32, #tpu.memory_space<vmem>>, vector<1x128xf32>
    %18 = vector.broadcast %17 : vector<1x128xf32> to vector<8x128xf32>
    %19 = arith.addf %16, %18 : vector<8x128xf32>
    %c0_17 = arith.constant 0 : index
    %c0_18 = arith.constant 0 : index
    %20 = vector.load %arg9[%c0_17, %c0_18] : memref<8x128xf32, #tpu.memory_space<vmem>>, vector<8x128xf32>
    tpu.vector_store %arg9[%c0_17, %c0_18], %19 {strides = array<i32>} : memref<8x128xf32, #tpu.memory_space<vmem>>, vector<8x128xf32>,
    return
  }
  func.func @transform_0(%arg0: i32) -> (i32, i32) {
    %c0_i32 = arith.constant 0 : i32
    %c0_i32_0 = arith.constant 0 : i32
    return %arg0, %c0_i32 : i32, i32
  }
  func.func @transform_1(%arg0: i32) -> (i32, i32) {
    %c0_i32 = arith.constant 0 : i32
    %c0_i32_0 = arith.constant 0 : i32
    %c0_i32_1 = arith.constant 0 : i32
    return %c0_i32, %c0_i32_0 : i32, i32
  }
  func.func @transform_2(%arg0: i32) -> (i32, i32) {
    %c0_i32 = arith.constant 0 : i32
    %c0_i32_0 = arith.constant 0 : i32
    %c0_i32_1 = arith.constant 0 : i32
    return %c0_i32, %c0_i32_0 : i32, i32
  }
  func.func @transform_3(%arg0: i32) -> (i32, i32) {
    %c0_i32 = arith.constant 0 : i32
    %c0_i32_0 = arith.constant 0 : i32
    %c0_i32_1 = arith.constant 0 : i32
    return %c0_i32, %c0_i32_0 : i32, i32
  }
  func.func @transform_4(%arg0: i32) -> (i32, i32) {
    %c0_i32 = arith.constant 0 : i32
    %c0_i32_0 = arith.constant 0 : i32
    %c0_i32_1 = arith.constant 0 : i32
    return %c0_i32, %c0_i32_0 : i32, i32
  }
  func.func @transform_5(%arg0: i32) -> (i32, i32) {
    %c0_i32 = arith.constant 0 : i32
    %c0_i32_0 = arith.constant 0 : i32
    %c0_i32_1 = arith.constant 0 : i32
    return %c0_i32, %c0_i32_0 : i32, i32
  }
  func.func @transform_6(%arg0: i32) -> (i32, i32) {
    %c0_i32 = arith.constant 0 : i32
    %c0_i32_0 = arith.constant 0 : i32
    %c0_i32_1 = arith.constant 0 : i32
    return %c0_i32, %c0_i32_0 : i32, i32
  }
  func.func @transform_7(%arg0: i32) -> (i32, i32) {
    %c0_i32 = arith.constant 0 : i32
    %c0_i32_0 = arith.constant 0 : i32
    return %arg0, %c0_i32 : i32, i32
  }
  func.func @transform_8(%arg0: i32) -> (i32, i32) {
    %c0_i32 = arith.constant 0 : i32
    %c0_i32_0 = arith.constant 0 : i32
    return %arg0, %c0_i32 : i32, i32
  }
}

</mosaic_0001>

<bundles_post_ra>
// kernel: tpu_custom_call.1
= control target key start
LH: loop header
LB: loop body
LE: loop exit
PB: predicated region body
PF: predicated region fallthrough
CT: control target
= control target key end

     0   :  { %s1127_s0 = inlined_call_operand.hbm [shape: f32[16,32], index: 0, kind: input, shape index: {}]   ;;  %s1128_s1 = inlined_call_operand.hbm [shape: f32[32,128], index: 1, kind: input, shape index: {}]   ;;  %s1129_s2 = inlined_call_operand.vmem [shape: f32[1,128], index: 2, kind: input, shape index: {}]   ;;  %s1130_s3 = inlined_call_operand.vmem [shape: f32[1,128], index: 3, kind: input, shape index: {}]   ;;  %s1131_s4 = inlined_call_operand.vmem [shape: f32[1,128], index: 4, kind: input, shape index: {}]   ;;  %s1132_s5 = inlined_call_operand.hbm [shape: f32[128,128], index: 5, kind: input, shape index: {}]   ;;  %s1133_s6 = inlined_call_operand.vmem [shape: f32[1,128], index: 6, kind: input, shape index: {}]   ;;  %s1134_s7 = inlined_call_operand.hbm [shape: f32[16,128], index: 7, kind: output, shape index: {0}]   ;;  %s1135_s8 = inlined_call_operand.hbm [shape: f32[16,128], index: 8, kind: output, shape index: {1}]  }
   0x1   :  { %1136 = sst [smem:[#allocation16_spill]] %s1128_s1 }
   0x2   :  { %1137 = sst [smem:[#allocation17_spill]] %s1132_s5 }
   0x3   :  { %14 = vsyncpa [#allocation3], 0 }
   0x4   :  { %16 = vsyncpa [#allocation3 + $0x1], 0 }
   0x5   :  { %17 = vsyncpa [#allocation6], 0 }
   0x6   :  { %18 = vsyncpa [#allocation4], 0 }
   0x7   :  { %20 = vsyncpa [#allocation4 + $0x1], 0 }
   0x8   :  { %21 = vsyncpa [#allocation10], 0 }
   0x9   :  { %23 = vsyncpa [#allocation10 + $0x1], 0  ;;  %s951_s27 = smov 0   ;;  %s953_s28 = smov 0  }
   0xa   :  { %s955_s29 = smov 0   ;;  %s957_s30 = smov 0  }
   0xb LB: > { %s1138_s1 = sld [smem:[#allocation16_spill]]  ;;  %s975_s12 = sadd.s32 4294967295, %s900_s30   ;;  %s900_s30 = sphi %s957_s30, %s1152_s30   ;;  %s896_s29 = sphi %s955_s29, %s1151_s29   ;;  %s892_s28 = sphi %s953_s28, %s1150_s28   ;;  %s888_s27 = sphi %s951_s27, %s1149_s27  }
   0xc   : > { %p611_p0 = scmp.ge.s32.totalorder %s900_s30, 1  ;;  %p50_p1 = scmp.eq.s32.totalorder %s975_s12, 0 }
   0xd   : > { %p238_p2 = scmp.lt.s32.totalorder %s900_s30, 3  ;;  %s902_s14 = smov [#allocation5]  }
   0xe   : > { %s251_s15 = sshll.u32 %s902_s14, 4  ;;  %s1140_s5 = sld [smem:[#allocation17_spill]]  ;;  %s252_s15 = int_to_ptr.vmem [resolvable:$true] %s251_s15 }
   0xf   : > { %p980_p3 = pnand %p611_p0, %p238_p2  ;;  %s903_s19 = smov [#allocation7]  }
  0x10   : > { %s274_s20 = sshll.u32 %s903_s19, 4  ;;  %s904_s21 = smov 128   ;;  %s275_s20 = int_to_ptr.vmem [resolvable:$true] %s274_s20 }
  0x11   : > { %s249_s11 = sshll.u32 %s1138_s1, 4  ;;  %p644_p4 = pneg %p980_p3  ;;  %s250_s11 = int_to_ptr.hbm [resolvable:$true] %s249_s11 }
  0x12   : > { %s905_s22 = smov 8   ;;  %s610_s23 = sadd.s32 4294967294, %s900_s30  }
  0x13   : > { %p645_p6 = pnand %p644_p4, %p50_p1  ;;  %s994_s24 = sadd.s32 1, %s900_s30  }
  0x14   : > { %s272_s18 = sshll.u32 %s1140_s5, 4  ;;  %s33_s25 = ssub.s32 %s900_s30, %s994_s24  ;;  %s273_s18 = int_to_ptr.hbm [resolvable:$true] %s272_s18 }
  0x15   : > { %647 = dma.hbm_to_vmem [thread:$0]  (!%p645_p6), %s250_s11, 512, %s252_s15, [#allocation6], %s904_s21, %s904_s21, %s905_s22  }
  0x16   : > { %650 = dma.hbm_to_vmem [thread:$0]  (!%p645_p6), %s273_s18, 2048, %s275_s20, [#allocation6], %s904_s21, %s904_s21, %s905_s22  }
  0x17   : > { %s36_s26 = sadd.s32 1, %s896_s29  ;;  %p34_p7 = scmp.eq.s32.totalorder %s33_s25, 0 }
  0x18   : > { %p43_p8 = scmp.ne.s32.totalorder %s896_s29, %s892_s28  ;;  %p44_p9 = scmp.eq.s32.totalorder %s900_s30, 0 }
  0x19   : > { %p49_p10 = scmp.ne.s32.totalorder %s892_s28, %s888_s27  ;;  %p199_p13 = scmp.eq.s32.totalorder %s975_s12, 1 }
  0x1a   : > { %s1005_s9 = scalar_select %p34_p7, %s896_s29, %s36_s26  }
  0x1b   : > { %p1007_p11 = por %p44_p9, %p43_p8  ;;  %p1013_p12 = por %p50_p1, %p49_p10 }
  0x1c   : > { %1141 = sst [smem:[#allocation15_spill]] %s1005_s9  ;;  %p205_p0 = scmp.eq.s32.totalorder %s610_s23, 1 }
  0x1d   : > { %p664_p2 = scmp.lt.s32.totalorder %s900_s30, 2  ;;  %s291_s14 = sand.u32 1, %s896_s29  }
  0x1e   : > { %p1020_p4 = por %p199_p13, %p43_p8  ;;  %p1024_p6 = por %p205_p0, %p49_p10 }
  0x1f   : > { %s615_s17 = sshll.u32 %s291_s14, 3  ;;  %s616_s18 = sshll.u32 %s900_s30, 3 }
  0x20   : > { %s299_s21 = scalar_lea.hbm %s1127_s0, %s616_s18  ;;  %s295_s22 = scalar_lea.vmem [#allocation2], %s615_s17 }
  0x21   : > { %s303_s25 = sshll.u32 %s295_s22, 4  ;;  %s301_s26 = sshll.u32 %s299_s21, 4  ;;  %s304_s25 = int_to_ptr.vmem [resolvable:$true] %s303_s25  ;;  %s302_s26 = int_to_ptr.hbm [resolvable:$true] %s301_s26 }
  0x22   : > { %p1034_p7 = pnand %p664_p2, %p1007_p11  ;;  %s292_s1 = scalar_lea.sflag [#allocation3], %s291_s14 }
  0x23   : > { %s768_s5 = sshra.s32 %s302_s26, 4  ;;  %s775_s19 = scalar_lea.hbm %s1127_s0, 16  ;;  %s769_s5 = int_to_ptr.hbm [resolvable:$true] %s768_s5 }
  0x24   : > { %s770_s9 = scalar_lea.hbm %s769_s5, 8  ;;  %p772_p9 = pneg %p1034_p7 }
  0x25   : > { %p771_p8 = scmp.ne.s32.totalorder %s769_s5, %s770_s9  ;;  %p776_p11 = scmp.lt.s32.totalorder %s769_s5, %s1127_s0 }
  0x26   : > { %p777_p0 = scmp.lt.s32.totalorder %s775_s19, %s770_s9 }
  0x27   : > { %p773_p10 = pnand %p772_p9, %p771_p8 }
  0x28   : > { %p778_p2 = por %p777_p0, %p776_p11 }
  0x29   : > { %p774_p13 = pneg %p773_p10 }
  0x2b   : > { %p779_p5 = pnand %p778_p2, %p774_p13 }
  0x2d   : > { %782 = shalt.err (!%p779_p5)
}
  0x2e   : > { %654 = dma.hbm_to_vmem [thread:$0]  (!%p1034_p7), %s302_s26, 128, %s304_s25, %s292_s1  }
  0x2f   : > { %312 = sbr.rel (%p980_p3) target bundleno = 328 (0x148), region = 48  ;;  %s1051_s14 = sand.u32 (!%p980_p3), 1, %s892_s28  }
  0x30   : > { %s1054_s21 = sshll.u32 (!%p980_p3), %s1051_s14, 3  ;;  %s315_s5 = scalar_lea.sflag (!%p980_p3), [#allocation3], %s1051_s14 }
  0x31   : > { %s318_s9 = scalar_lea.vmem (!%p980_p3), [#allocation2], %s1054_s21 }
  0x34   : > { %871 = dma.done.wait (%p1013_p12), %s315_s5, 128  }
  0x35   : > { %873 = vsyncadd (%p1013_p12), %s315_s5, 4294967168 }
  0x36   : > { %875 = dma.done.wait (%p50_p1), [#allocation6], 2560  }
  0x37   : > { %877 = vsyncadd (%p50_p1), [#allocation6], 4294964736  ;;  %v371_v0 = vld [vmem:[#allocation5 + $0x18] sm:$0xff]  ;;  %v370_v1 = vld [vmem:[#allocation5 + $0x10] sm:$0xff]  ;;  %vm376_vm0 = vcmask 261120   ;;  %s626_s23 = sshll.u32 %s975_s12, 3 }
  0x38   : > { %392 = vmatpush.msra.mxu0 %v371_v0  ;;  %v427_v2 = vld [vmem:[#allocation7 + $0x78] sm:$0xff]  ;;  %v369_v3 = vld [vmem:[#allocation5 + $0x8] sm:$0xff]  ;;  %v426_v4 = vld [vmem:[#allocation7 + $0x70] sm:$0xff]  ;;  %s469_s19 = scalar_lea.hbm %s1134_s7, %s626_s23  ;;  %s359_s20 = scalar_lea.vmem [#allocation8], %s1054_s21 }
  0x39   : > { %432 = vmatpush.msra.mxu1 %v427_v2  ;;  %v425_v5 = vld [vmem:[#allocation7 + $0x68] sm:$0xff]  ;;  %v368_v6 = vld [vmem:[#allocation5] sm:$0xff]  ;;  %v367_v7 = vld [vmem:[%s318_s9] sm:$0xff]  ;;  %s471_s10 = sshll.u32 %s359_s20, 4  ;;  %s473_s5 = sshll.u32 %s469_s19, 4  ;;  %s472_s10 = int_to_ptr.vmem [resolvable:$true] %s471_s10  ;;  %s474_s5 = int_to_ptr.hbm [resolvable:$true] %s473_s5 }
  0x3a   : > { %393 = vmatpush.msra.mxu0 %v370_v1  ;;  %v424_v8 = vld [vmem:[#allocation7 + $0x60] sm:$0xff]  ;;  %v423_v9 = vld [vmem:[#allocation7 + $0x58] sm:$0xff]  ;;  %v422_v10 = vld [vmem:[#allocation7 + $0x50] sm:$0xff]  ;;  %s454_s9 = scalar_lea.sflag [#allocation4], %s1051_s14  ;;  %s812_s1 = sshra.s32 %s474_s5, 4  ;;  %s813_s1 = int_to_ptr.hbm [resolvable:$true] %s812_s1 }
  0x3b   : > { %433 = vmatpush.msra.mxu1 %v426_v4  ;;  %v421_v11 = vld [vmem:[#allocation7 + $0x48] sm:$0xff]  ;;  %v420_v12 = vld [vmem:[#allocation7 + $0x40] sm:$0xff]  ;;  %v419_v13 = vld [vmem:[#allocation7 + $0x38] sm:$0xff]  ;;  %s814_s13 = scalar_lea.hbm %s813_s1, 8  ;;  %s818_s22 = scalar_lea.hbm %s1134_s7, 16 }
  0x3c   : > { %394 = vmatpush.msra.mxu0 %v369_v3  ;;  %v418_v14 = vld [vmem:[#allocation7 + $0x30] sm:$0xff]  ;;  %v417_v15 = vld [vmem:[#allocation7 + $0x28] sm:$0xff]  ;;  %v416_v16 = vld [vmem:[#allocation7 + $0x20] sm:$0xff]  ;;  %p815_p1 = scmp.ne.s32.totalorder %s813_s1, %s814_s13  ;;  %p819_p12 = scmp.lt.s32.totalorder %s813_s1, %s1134_s7 }
  0x3d   : > { %434 = vmatpush.msra.mxu1 %v425_v5  ;;  %v415_v17 = vld [vmem:[#allocation7 + $0x18] sm:$0xff]  ;;  %v414_v18 = vld [vmem:[#allocation7 + $0x10] sm:$0xff]  ;;  %v413_v19 = vld [vmem:[#allocation7 + $0x8] sm:$0xff]  ;;  %p820_p7 = scmp.lt.s32.totalorder %s818_s22, %s814_s13 }
  0x3e   : > { %395 = vmatpush.msra.mxu0 %v368_v6  ;;  %v412_v20 = vld [vmem:[#allocation7] sm:$0xff]  ;;  %v704_v21 = vld [vmem:[%s1129_s2] ss:$0 sm:$0xff]  ;;  %p816_p3 = pnand %p815_p1, %p1020_p4 }
  0x3f   : > { %623 = vmatmul.msk.f32.vlgmr.msra.gmra.mxu0 %vm376_vm0, %v367_v7  ;;  %435 = vmatpush.msra.mxu1 %v424_v8  ;;  %v705_v24 = vld [vmem:[%s1130_s3] ss:$0 sm:$0xff]  ;;  %p821_p8 = por %p820_p7, %p819_p12 }
  0x40   : > { %v706_v26 = vld [vmem:[%s1131_s4] ss:$0 sm:$0xff]  ;;  %p817_p5 = pneg %p816_p3 }
  0x41   : > { %436 = vmatpush.msra.mxu1 %v423_v9 }
  0x42   : > { %p822_p9 = pnand %p821_p8, %p817_p5 }
  0x43   : > { %437 = vmatpush.msra.mxu1 %v422_v10 }
  0x45   : > { %438 = vmatpush.msra.mxu1 %v421_v11 }
  0x47   : > { %439 = vmatpush.msra.mxu1 %v420_v12 }
  0x49   : > { %440 = vmatpush.msra.mxu1 %v419_v13 }
  0x4b   : > { %441 = vmatpush.msra.mxu1 %v418_v14 }
  0x4d   : > { %442 = vmatpush.msra.mxu1 %v417_v15 }
  0x4f   : > { %443 = vmatpush.msra.mxu1 %v416_v16 }
  0x51   : > { %444 = vmatpush.msra.mxu1 %v415_v17 }
  0x53   : > { %445 = vmatpush.msra.mxu1 %v414_v18 }
  0x55   : > { %446 = vmatpush.msra.mxu1 %v413_v19 }
  0x57   : > { %447 = vmatpush.msra.mxu1 %v412_v20 }
  0xbc   : > { %v397_v22 = vpop.f32.mrf.mxu0 }
  0xbd   : > { %v398_v23 = vadd.f32 %v704_v21, %v397_v22 }
  0xbf   : > { %v400_v25 = vmax.f32 %v398_v23, 0.0 }
  0xc1   : > { %v405_v27 = vmul.f32 %v705_v24, %v400_v25 }
  0xc3   : > { %v410_v28 = vadd.f32 %v706_v26, %v405_v27 }
  0xc5   : > { %448 = vmatmul.f32.vlgmr.msra.gmra.mxu1 %v410_v28  ;;  %411 = vst [vmem:[%s359_s20] sm:$0xff] %v410_v28 }
  0xc6   : > { %825 = shalt.err (!%p822_p9)
}
  0xc7   : > { %640 = dma.vmem_to_hbm [thread:$0]  (%p1020_p4), %s472_s10, 128, %s474_s5, %s454_s9   ;;  %v707_v29 = vld [vmem:[%s1133_s6] ss:$0 sm:$0xff] }
  0xc8   : > { %s483_s19 = scalar_lea.hbm %s1135_s8, %s626_s23  ;;  %s366_s11 = scalar_lea.vmem [#allocation9], %s1054_s21 }
  0xc9   : > { %s485_s1 = sshll.u32 %s366_s11, 4  ;;  %s487_s13 = sshll.u32 %s483_s19, 4  ;;  %s486_s1 = int_to_ptr.vmem [resolvable:$true] %s485_s1  ;;  %s488_s13 = int_to_ptr.hbm [resolvable:$true] %s487_s13 }
  0xca   : > { %s459_s22 = scalar_lea.sflag [#allocation10], %s1051_s14  ;;  %s840_s25 = sshra.s32 %s488_s13, 4  ;;  %s841_s25 = int_to_ptr.hbm [resolvable:$true] %s840_s25 }
  0xcb   : > { %s842_s10 = scalar_lea.hbm %s841_s25, 8  ;;  %s846_s9 = scalar_lea.hbm %s1135_s8, 16 }
  0xcc   : > { %p843_p10 = scmp.ne.s32.totalorder %s841_s25, %s842_s10  ;;  %p847_p0 = scmp.lt.s32.totalorder %s841_s25, %s1135_s8 }
  0xcd   : > { %p848_p2 = scmp.lt.s32.totalorder %s846_s9, %s842_s10 }
  0xce   : > { %p844_p13 = pnand %p843_p10, %p1020_p4 }
  0xcf   : > { %p849_p1 = por %p848_p2, %p847_p0 }
  0xd0   : > { %p845_p11 = pneg %p844_p13 }
  0xd2   : > { %p850_p3 = pnand %p849_p1, %p845_p11 }
 0x142   : > { %v449_v30 = vpop.f32.mrf.mxu1 }
 0x143   : > { %v450_v31 = vadd.f32 %v707_v29, %v449_v30 }
 0x145   : > { %452 = vst [vmem:[%s366_s11] sm:$0xff] %v450_v31 }
 0x146   : > { %853 = shalt.err (!%p850_p3)
}
 0x147   : > { %641 = dma.vmem_to_hbm [thread:$0]  (%p1020_p4), %s486_s1, 128, %s488_s13, %s459_s22  }
 0x148 PF: > { %s499_s14 = sand.u32 1, %s888_s27   ;;  %p1147_p5 = scmp.ge.s32.totalorder %s900_s30, 2 }
 0x149   : > { %s500_s17 = scalar_lea.sflag [#allocation4], %s499_s14 }
 0x14a   : > { %p656_p12 = pnand %p1147_p5, %p1024_p6 }
 0x14c   : > { %p657_p7 = pneg %p656_p12 }
 0x14e   : > { %879 = dma.done.wait (%p657_p7), %s500_s17, 128  }
 0x14f   : > { %881 = vsyncadd (%p657_p7), %s500_s17, 4294967168  ;;  %s510_s18 = scalar_lea.sflag [#allocation10], %s499_s14 }
 0x150   : > { %883 = dma.done.wait (%p657_p7), %s510_s18, 128  }
 0x151   : > { %885 = vsyncadd (%p657_p7), %s510_s18, 4294967168  ;;  %s1148_s15 = sld [smem:[#allocation15_spill]]  ;;  %p26_p4 = scmp.ge.s32.totalorder %s994_s24, 4  }
 0x152   : > { %s1149_s27 = smov %s892_s28  ;;  %s1150_s28 = smov %s896_s29 }
 0x153   : > { %s1152_s30 = smov %s994_s24  ;;  %28 = sbr.rel (!%p26_p4) target bundleno = 11 (0xb), region = 118 }
 0x157   : > { %s1151_s29 = smov %s1148_s15 }
 0x158   :  { %516 = vsyncpa [#allocation3], 1 }
 0x159   :  { %518 = vsyncpa [#allocation3 + $0x1], 1 }
 0x15a   :  { %519 = vsyncpa [#allocation6], 1 }
 0x15b   :  { %520 = vsyncpa [#allocation4], 1 }
 0x15c   :  { %522 = vsyncpa [#allocation4 + $0x1], 1 }
 0x15d   :  { %523 = vsyncpa [#allocation10], 1 }
 0x15e   :  { %525 = vsyncpa [#allocation10 + $0x1], 1 }

</bundles_post_ra>
